<compile_context>
chip_gen: v5e
topology: v5e:2x2
jax: 0.10.0
libtpu: 0.0.40
codegen_flags: <defaults>
</compile_context>

<pallas_src>
import functools

import jax
import jax.numpy as jnp
from jax.experimental import pallas as pl
from jax.experimental.pallas import tpu as pltpu

_LANE = 128       # lane width (last dim)
_SUBLANE = 8      # f32 sublane height (second-to-last dim)


def _round_up(v, m):
    return ((v + m - 1) // m) * m


def _vmem_budget_bytes():
    """Usable per-core VMEM budget (leave ~25% headroom below physical)."""
    try:
        cap = int(pltpu.get_tpu_info().vmem_capacity_bytes)
    except Exception:                       # conservative fallback = v7x per-TC VMEM
        cap = 64 * 1024 * 1024
    return (cap * 3) // 4


def _pad_and_flatten(x, c_pad, s_pad):
    """(B, C, D, H, W) -> zero-padded, lane-dense (B, c_pad, s_pad)."""
    b, c, d, h, w = x.shape
    s = d * h * w
    x_flat = x.reshape(b, c, s)
    if c_pad != c or s_pad != s:
        x_flat = jnp.pad(x_flat, ((0, 0), (0, c_pad - c), (0, s_pad - s)))
    return x_flat


def _pad_weights(w1, w2, c, c_pad):
    """Zero-pad the channel axis of both FC weights (padded channels pool to 0)."""
    if c_pad != c:
        w1 = jnp.pad(w1, ((0, 0), (0, c_pad - c)))
        w2 = jnp.pad(w2, ((0, c_pad - c), (0, 0)))
    return w1, w2


# ---------------------------------------------------------------------------
# Fused single-pass kernel: pool + fc1 + relu + fc2 + sigmoid + scale.
# ---------------------------------------------------------------------------
def _se_fused_kernel(x_ref, w1_ref, w2_ref, o_ref, *, inv_true_s):
    # x_ref / o_ref: (1, C_pad, S_pad) in the input's native dtype.
    # w1_ref: (C_red, C_pad) f32, w2_ref: (C_pad, C_red) f32 (cast once outside).
    x = x_ref[0]                                                   # (C_pad, S_pad)

    # Squeeze: f32-accumulating sum over the lane (spatial) axis; divide by the
    # TRUE spatial size -- lane padding is zeros and contributes nothing.
    pooled = jnp.sum(x, axis=-1, keepdims=True, dtype=jnp.float32) * inv_true_s

    # Excitation: fc1 -> relu -> fc2 -> sigmoid.  Kept as tiny MXU matvecs: the
    # latency is negligible next to streaming the (C, S) block, and a VPU
    # broadcast-reduce would need an extra sublane->lane relayout of `pooled`.
    hid = jnp.maximum(
        jnp.dot(w1_ref[...], pooled, preferred_element_type=jnp.float32), 0.0)
    gate = jax.nn.sigmoid(
        jnp.dot(w2_ref[...], hid, preferred_element_type=jnp.float32))  # (C_pad, 1)

    # Scale: broadcast per-channel gate over the lane axis.  Multiply in the
    # input's native dtype -- no full-size f32 copy of the block.
    o_ref[0] = x * gate.astype(x.dtype)


def _se_fused(x, w1f, w2f, c_pad, s_pad, vmem_limit):
    b, c, d, h, w = x.shape
    s = d * h * w
    c_red = w1f.shape[0]
    x_flat = _pad_and_flatten(x, c_pad, s_pad)
    w1p, w2p = _pad_weights(w1f, w2f, c, c_pad)

    out_flat = pl.pallas_call(
        functools.partial(_se_fused_kernel, inv_true_s=1.0 / s),
        out_shape=jax.ShapeDtypeStruct((b, c_pad, s_pad), x.dtype),
        grid_spec=pltpu.PrefetchScalarGridSpec(
            num_scalar_prefetch=0,
            grid=(b,),
            in_specs=[
                pl.BlockSpec((1, c_pad, s_pad), lambda i: (i, 0, 0)),
                pl.BlockSpec((c_red, c_pad), lambda i: (0, 0)),
                pl.BlockSpec((c_pad, c_red), lambda i: (0, 0)),
            ],
            out_specs=pl.BlockSpec((1, c_pad, s_pad), lambda i: (i, 0, 0)),
        ),
        compiler_params=pltpu.CompilerParams(
            dimension_semantics=("parallel",),
            vmem_limit_bytes=vmem_limit,
        ),
        # Written in place when the caller donates x; XLA inserts a copy otherwise.
        input_output_aliases={0: 0},
    )(x_flat, w1p, w2p)

    return out_flat[:, :c, :s].reshape(b, c, d, h, w)


# ---------------------------------------------------------------------------
# Two-pass fallback: (1) tiled per-channel sum, (2) tiled broadcast scale.
# ---------------------------------------------------------------------------
def _pool_sum_kernel(x_ref, sum_ref):
    # x_ref: (1, C_pad, s_tile); sum_ref: (1, C_pad, 1) f32 accumulator, resident
    # across the S-chunk axis (its index_map ignores the chunk index).
    @pl.when(pl.program_id(1) == 0)
    def _():
        sum_ref[...] = jnp.zeros_like(sum_ref)

    sum_ref[0] += jnp.sum(x_ref[0], axis=-1, keepdims=True, dtype=jnp.float32)


def _scale_kernel(x_ref, gate_ref, o_ref):
    # x_ref / o_ref: (1, C_pad, s_tile); gate_ref: (1, C_pad, 1) f32.
    x = x_ref[0]
    o_ref[0] = x * gate_ref[0].astype(x.dtype)


def _se_two_pass(x, w1f, w2f, c_pad, budget):
    b, c, d, h, w = x.shape
    s = d * h * w
    itemsize = jnp.dtype(x.dtype).itemsize

    # Largest lane-multiple spatial tile whose double-buffered in+out working
    # set (2 bufs x (in + out) = 4 x tile bytes) fits the budget, with slack.
    per_lane_chunk = 4 * c_pad * itemsize * _LANE
    avail = max(budget - (2 << 20), per_lane_chunk)
    s_tile = max(_LANE, (avail // (4 * c_pad * itemsize)) // _LANE * _LANE)
    s_tile = min(s_tile, _round_up(s, _LANE))
    # TODO(synk): also tile the channel axis if C alone overflows a 128-lane chunk.
    s_pad = _round_up(s, s_tile)
    n_chunks = s_pad // s_tile

    x_flat = _pad_and_flatten(x, c_pad, s_pad)
    w1p, w2p = _pad_weights(w1f, w2f, c, c_pad)

    # Pass 1: per-(batch, channel) spatial sum accumulated across S-chunks.
    sums = pl.pallas_call(
        _pool_sum_kernel,
        out_shape=jax.ShapeDtypeStruct((b, c_pad, 1), jnp.float32),
        grid_spec=pltpu.PrefetchScalarGridSpec(
            num_scalar_prefetch=0,
            grid=(b, n_chunks),
            in_specs=[pl.BlockSpec((1, c_pad, s_tile), lambda i, j: (i, 0, j))],
            out_specs=pl.BlockSpec((1, c_pad, 1), lambda i, j: (i, 0, 0)),
        ),
        compiler_params=pltpu.CompilerParams(
            dimension_semantics=("parallel", "arbitrary"),
            vmem_limit_bytes=budget,
        ),
    )(x_flat)

    # Tiny excitation FCs in plain JAX (a (B, C) matvec is not worth a kernel).
    pooled = sums[:, :, 0] * (1.0 / s)                    # true-S mean, (B, C_pad)
    hid = jnp.maximum(pooled @ w1p.T, 0.0)                # (B, C_red)
    gate = jax.nn.sigmoid(hid @ w2p.T)[:, :, None]        # (B, C_pad, 1) f32

    # Pass 2: stream x again and apply the per-channel gate.
    out_flat = pl.pallas_call(
        _scale_kernel,
        out_shape=jax.ShapeDtypeStruct((b, c_pad, s_pad), x.dtype),
        grid_spec=pltpu.PrefetchScalarGridSpec(
            num_scalar_prefetch=0,
            grid=(b, n_chunks),
            in_specs=[
                pl.BlockSpec((1, c_pad, s_tile), lambda i, j: (i, 0, j)),
                pl.BlockSpec((1, c_pad, 1), lambda i, j: (i, 0, 0)),
            ],
            out_specs=pl.BlockSpec((1, c_pad, s_tile), lambda i, j: (i, 0, j)),
        ),
        compiler_params=pltpu.CompilerParams(
            dimension_semantics=("parallel", "parallel"),
            vmem_limit_bytes=budget,
        ),
        input_output_aliases={0: 0},
    )(x_flat, gate)

    return out_flat[:, :c, :s].reshape(b, c, d, h, w)


# ---------------------------------------------------------------------------
# Public wrapper.
# ---------------------------------------------------------------------------
@functools.partial(jax.jit, static_argnames=("max_vmem_bytes",))
def se_layer_3d(x, w1, w2, *, max_vmem_bytes=None):
    """SELayer3D forward.  x: (B, C, D, H, W); w1: (C//r, C); w2: (C, C//r)."""
    _, c, d, h, w = x.shape
    s = d * h * w

    # Hoist the weight casts out of the kernels: pass f32 weights once.
    w1f = w1.astype(jnp.float32)
    w2f = w2.astype(jnp.float32)

    c_pad = _round_up(c, _SUBLANE)
    s_pad = _round_up(s, _LANE)
    itemsize = jnp.dtype(x.dtype).itemsize
    budget = _vmem_budget_bytes() if max_vmem_bytes is None else int(max_vmem_bytes)

    # Fused single-pass working set: in + out (1, C_pad, S_pad) blocks, each
    # double-buffered, plus the (tiny) f32 weights and some slack.  This
    # estimate drives the path choice; the scoped-VMEM limit itself is set to
    # the full budget so an under-estimate can never trip a spurious failure.
    fused_bytes = (4 * c_pad * s_pad * itemsize
                   + 4 * (w1f.size + w2f.size) * 4
                   + (2 << 20))

    if fused_bytes <= budget:
        return _se_fused(x, w1f, w2f, c_pad, s_pad, budget)
    return _se_two_pass(x, w1f, w2f, c_pad, budget)


def _reference(x, w1, w2):
    # Pure-JAX reference matching the PyTorch module.
    pooled = jnp.mean(x, axis=(2, 3, 4))                  # (B, C)
    hid = jnp.maximum(pooled @ w1.T, 0.0)                 # (B, C//r)
    gate = jax.nn.sigmoid(hid @ w2.T)                     # (B, C)
    return x * gate[:, :, None, None, None]


if __name__ == "__main__":
    key = jax.random.PRNGKey(0)
    kx, k1, k2 = jax.random.split(key, 3)

    # Small shapes consistent with the module: channel=32, reduction=16.
    B, C, D, H, W = 2, 32, 8, 8, 8
    reduction = 16
    C_red = C // reduction

    x = jax.random.normal(kx, (B, C, D, H, W), dtype=jnp.float32)
    w1 = jax.random.normal(k1, (C_red, C), dtype=jnp.float32) * 0.1
    w2 = jax.random.normal(k2, (C, C_red), dtype=jnp.float32) * 0.1

    ref = _reference(x, w1, w2)

    # Default path (fused single-pass for these shapes).
    out = jax.block_until_ready(se_layer_3d(x, w1, w2))
    assert out.shape == x.shape
    assert jnp.allclose(out, ref, atol=1e-5, rtol=1e-5), "fused path mismatch"

    # Also exercise the spatially-tiled two-pass fallback (the path large C*S /
    # v7x shapes take) by forcing a tiny VMEM budget.
    out2 = jax.block_until_ready(se_layer_3d(x, w1, w2, max_vmem_bytes=2 << 20))
    assert jnp.allclose(out2, ref, atol=1e-5, rtol=1e-5), "tiled path mismatch"

    print("KERNEL_OK")
</pallas_src>

<mosaic_0001>
module attributes {stable_mosaic.version = 11 : i64} {
  func.func @_se_fused_kernel(%arg0: i32, %arg1: memref<1x32x512xf32, #tpu.memory_space<vmem>>, %arg2: memref<2x32xf32, #tpu.memory_space<vmem>>, %arg3: memref<32x2xf32, #tpu.memory_space<vmem>>, %arg4: memref<1x32x512xf32, #tpu.memory_space<vmem>>) attributes {dimension_semantics = [#tpu.dimension_semantics<parallel>], iteration_bounds = array<i64: 2>, scalar_prefetch = 0 : i64, scratch_operands = 0 : i64, tpu.core_type = #tpu.core_type<tc>, window_params = [{transform_indices = @transform_0, window_bounds = array<i64: 1, 32, 512>}, {pipeline_mode = #tpu.pipeline_mode<synchronous>, transform_indices = @transform_1, window_bounds = array<i64: 2, 32>}, {pipeline_mode = #tpu.pipeline_mode<synchronous>, transform_indices = @transform_2, window_bounds = array<i64: 32, 2>}, {transform_indices = @transform_3, window_bounds = array<i64: 1, 32, 512>}]} {
    %c0 = arith.constant 0 : index
    %c0_0 = arith.constant 0 : index
    %c0_1 = arith.constant 0 : index
    %0 = vector.load %arg1[%c0, %c0_0, %c0_1] : memref<1x32x512xf32, #tpu.memory_space<vmem>>, vector<1x32x512xf32>
    %1 = vector.shape_cast %0 : vector<1x32x512xf32> to vector<32x512xf32>
    %cst = arith.constant dense<0.000000e+00> : vector<32xf32>
    %2 = vector.multi_reduction <add>, %1, %cst [1] : vector<32x512xf32> to vector<32xf32>
    %3 = vector.shape_cast %2 : vector<32xf32> to vector<32x1xf32>
    %cst_2 = arith.constant 0.001953125 : f32
    %4 = vector.broadcast %cst_2 : f32 to vector<32x1xf32>
    %5 = arith.mulf %3, %4 : vector<32x1xf32>
    %c0_3 = arith.constant 0 : index
    %c0_4 = arith.constant 0 : index
    %6 = vector.load %arg2[%c0_3, %c0_4] : memref<2x32xf32, #tpu.memory_space<vmem>>, vector<2x32xf32>
    %cst_5 = arith.constant dense<0.000000e+00> : vector<2x1xf32>
    %7 = tpu.matmul %6, %5, %cst_5 {dimension_numbers = #tpu.dot_dimension_numbers<[1], [0], [0], [1], [0, 0, 1, 1], [], []>} : vector<2x32xf32>, vector<32x1xf32>, vector<2x1xf32> -> vector<2x1xf32>
    %cst_6 = arith.constant 0.000000e+00 : f32
    %8 = vector.broadcast %cst_6 : f32 to vector<2x1xf32>
    %9 = arith.maximumf %7, %8 : vector<2x1xf32>
    %c0_7 = arith.constant 0 : index
    %c0_8 = arith.constant 0 : index
    %10 = vector.load %arg3[%c0_7, %c0_8] : memref<32x2xf32, #tpu.memory_space<vmem>>, vector<32x2xf32>
    %cst_9 = arith.constant dense<0.000000e+00> : vector<32x1xf32>
    %11 = tpu.matmul %10, %9, %cst_9 {dimension_numbers = #tpu.dot_dimension_numbers<[1], [0], [0], [1], [0, 0, 1, 1], [], []>} : vector<32x2xf32>, vector<2x1xf32>, vector<32x1xf32> -> vector<32x1xf32>
    %12 = arith.negf %11 : vector<32x1xf32>
    %13 = math.exp %12 : vector<32x1xf32>
    %cst_10 = arith.constant 1.000000e+00 : f32
    %14 = vector.broadcast %cst_10 : f32 to vector<32x1xf32>
    %15 = arith.addf %14, %13 : vector<32x1xf32>
    %16 = arith.divf %14, %15 : vector<32x1xf32>
    %17 = vector.broadcast %16 : vector<32x1xf32> to vector<32x512xf32>
    %18 = arith.mulf %1, %17 : vector<32x512xf32>
    %c0_11 = arith.constant 0 : index
    %c0_12 = arith.constant 0 : index
    %c0_13 = arith.constant 0 : index
    %19 = vector.load %arg4[%c0_11, %c0_12, %c0_13] : memref<1x32x512xf32, #tpu.memory_space<vmem>>, vector<1x32x512xf32>
    %20 = vector.shape_cast %19 : vector<1x32x512xf32> to vector<32x512xf32>
    %21 = vector.shape_cast %18 : vector<32x512xf32> to vector<1x32x512xf32>
    tpu.vector_store %arg4[%c0_11, %c0_12, %c0_13], %21 {strides = array<i32>} : memref<1x32x512xf32, #tpu.memory_space<vmem>>, vector<1x32x512xf32>,
    return
  }
  func.func @transform_0(%arg0: i32) -> (i32, i32, i32) {
    %c0_i32 = arith.constant 0 : i32
    %c0_i32_0 = arith.constant 0 : i32
    %c0_i32_1 = arith.constant 0 : i32
    return %arg0, %c0_i32, %c0_i32_0 : i32, i32, i32
  }
  func.func @transform_1(%arg0: i32) -> (i32, i32) {
    %c0_i32 = arith.constant 0 : i32
    %c0_i32_0 = arith.constant 0 : i32
    %c0_i32_1 = arith.constant 0 : i32
    return %c0_i32, %c0_i32_0 : i32, i32
  }
  func.func @transform_2(%arg0: i32) -> (i32, i32) {
    %c0_i32 = arith.constant 0 : i32
    %c0_i32_0 = arith.constant 0 : i32
    %c0_i32_1 = arith.constant 0 : i32
    return %c0_i32, %c0_i32_0 : i32, i32
  }
  func.func @transform_3(%arg0: i32) -> (i32, i32, i32) {
    %c0_i32 = arith.constant 0 : i32
    %c0_i32_0 = arith.constant 0 : i32
    %c0_i32_1 = arith.constant 0 : i32
    return %arg0, %c0_i32, %c0_i32_0 : i32, i32, i32
  }
}

</mosaic_0001>

<bundles_post_ra>
// kernel: se_layer_3d.1
= control target key start
LH: loop header
LB: loop body
LE: loop exit
PB: predicated region body
PF: predicated region fallthrough
CT: control target
= control target key end

     0   :  { %s552_s12 = smov 0   ;;  %s673_s0 = inlined_call_operand.vmem [shape: f32[2,32,512], index: 0, kind: input, shape index: {}, may-alias: {0,3}]   ;;  %s674_s1 = inlined_call_operand.vmem [shape: f32[2,32], index: 1, kind: input, shape index: {}]   ;;  %s675_s2 = inlined_call_operand.vmem [shape: f32[32,2], index: 2, kind: input, shape index: {}]   ;;  %s676_s3 = inlined_call_operand.vmem [shape: f32[2,32,512], index: 3, kind: output, shape index: {}, may-alias: {0,3}]  }
   0x1 LB: > { %s470_s13 = sadd.s32 4294967295, %s529_s12   ;;  %p474_p0 = scmp.ge.s32.totalorder %s529_s12, 1  ;;  %s529_s12 = sphi %s552_s12, %s13_s12  }
   0x2   : > { %p137_p1 = scmp.lt.s32.totalorder %s529_s12, 3 }
   0x4   : > { %p138_p2 = pnand %p474_p0, %p137_p1 }
   0x5   : > { %p161_p3 = scmp.lt.s32.totalorder (!%p138_p2), %s470_s13, 1 }
   0x6   : > { %141 = sbr.rel (%p138_p2) target bundleno = 571 (0x23b), region = 32 }
   0xb   : > { %s678_s13 = smov (!%p161_p3, %s470_s13), 1  ;;  %v211_v36 = vld [vmem:[%s674_s1] sm:$0x3]  ;;  %vm212_vm0 = vcmask 261120   ;;  %vm254_vm1 = vcmask 1041408   ;;  %vm241_vm2 = vcmask 15360  }
   0xc   : > { %s491_s14 = sshll.u32 %s678_s13, 7  ;;  %v237_v39 = vld [vmem:[%s675_s2] sm:$0xff]  ;;  %v238_v40 = vld [vmem:[%s675_s2 + $0x8] sm:$0xff]  ;;  %v240_v41 = vld [vmem:[%s675_s2 + $0x18] sm:$0xff]  ;;  %v531_v43 = vmov 0  }
   0xd   : > { %s165_s17 = scalar_lea.vmem %s673_s0, %s491_s14  ;;  %v239_v42 = vld [vmem:[%s675_s2 + $0x10] sm:$0xff]  ;;  %504 = vset.pattern.permute.xlu2 %v531_v43  ;;  %506 = vset.pattern.permute.xlu1 %v531_v43  ;;  %s639_s30 = scalar_lea.vmem %s676_s3, %s491_s14 }
   0xe   : > { %v568_v0 = vld [vmem:[%s165_s17 + $0x60] sm:$0xff]  ;;  %v570_v1 = vld [vmem:[%s165_s17 + $0x68] sm:$0xff]  ;;  %v572_v2 = vld [vmem:[%s165_s17 + $0x70] sm:$0xff]  ;;  %505 = vset.pattern.permute.xlu0 %v531_v43 }
   0xf   : > { %v202_v3 = vadd.f32 %v570_v1, %v568_v0  ;;  %v576_v4 = vld [vmem:[%s165_s17 + $0x20] sm:$0xff]  ;;  %v578_v5 = vld [vmem:[%s165_s17 + $0x28] sm:$0xff]  ;;  %v580_v6 = vld [vmem:[%s165_s17 + $0x78] sm:$0xff] }
  0x10   : > { %v582_v7 = vld [vmem:[%s165_s17 + $0x30] sm:$0xff]  ;;  %v192_v8 = vadd.f32 %v578_v5, %v576_v4  ;;  %v586_v9 = vld [vmem:[%s165_s17 + $0x40] sm:$0xff]  ;;  %v589_v11 = vld [vmem:[%s165_s17 + $0x38] sm:$0xff] }
  0x11   : > { %v203_v10 = vadd.f32 %v202_v3, %v572_v2  ;;  %v591_v12 = vld [vmem:[%s165_s17 + $0x48] sm:$0xff]  ;;  %v594_v14 = vld [vmem:[%s165_s17 + $0x50] sm:$0xff]  ;;  %v598_v16 = vld [vmem:[%s165_s17] sm:$0xff] }
  0x12   : > { %v193_v13 = vadd.f32 %v192_v8, %v582_v7  ;;  %v197_v15 = vadd.f32 %v591_v12, %v586_v9  ;;  %v600_v17 = vld [vmem:[%s165_s17 + $0x8] sm:$0xff]  ;;  %v603_v19 = vld [vmem:[%s165_s17 + $0x10] sm:$0xff]  ;;  %v609_v23 = vld [vmem:[%s165_s17 + $0x58] sm:$0xff] }
  0x13   : > { %v204_v18 = vadd.f32 %v203_v10, %v580_v6  ;;  %v187_v20 = vadd.f32 %v600_v17, %v598_v16  ;;  %v612_v25 = vld [vmem:[%s165_s17 + $0x18] sm:$0xff] }
  0x14   : > { %v194_v21 = vadd.f32 %v193_v13, %v589_v11  ;;  %v198_v22 = vadd.f32 %v197_v15, %v594_v14 }
  0x15   : > { %205 = vadd.xlane.f32.xlu0 %v204_v18  ;;  %v188_v24 = vadd.f32 %v187_v20, %v603_v19 }
  0x16   : > { %195 = vadd.xlane.f32.xlu1 %v194_v21  ;;  %v199_v26 = vadd.f32 %v198_v22, %v609_v23 }
  0x17   : > { %v189_v27 = vadd.f32 %v188_v24, %v612_v25 }
  0x1d   : > { %200 = vadd.xlane.f32.xlu0 %v199_v26 }
  0x1e   : > { %190 = vadd.xlane.f32.xlu1 %v189_v27 }
  0x88   : > { %v206_v28 = vpop.xlane.xlu0 %205 }
  0x89   : > { %v210_v29 = vmul.f32 0.001953125, %v206_v28  ;;  %v196_v30 = vpop.xlane.xlu1 %195 }
  0x8a   : > { %v208_v34 = vmul.f32 0.001953125, %v196_v30 }
  0x8b   : > { %228 = vmatpush.msra.mxu0 %v210_v29 }
  0x90   : > { %v201_v31 = vpop.xlane.xlu0 %200 }
  0x91   : > { %v209_v32 = vmul.f32 0.001953125, %v201_v31  ;;  %v191_v33 = vpop.xlane.xlu1 %190 }
  0x92   : > { %v207_v35 = vmul.f32 0.001953125, %v191_v33 }
  0x93   : > { %229 = vmatpush.msra.mxu0 %v209_v32 }
  0x95   : > { %230 = vmatpush.msra.mxu0 %v208_v34 }
  0x97   : > { %231 = vmatpush.msra.mxu0 %v207_v35 }
  0x98   : > { %479 = vmatmul.msk.f32.vlgmr.msra.gmra.mxu0 %vm212_vm0, %v211_v36 }
 0x115   : > { %v233_v37 = vpop.f32.mrf.mxu0 }
 0x116   : > { %v236_v38 = vmax.f32 %v233_v37, 0.0 }
 0x118   : > { %480 = vmatpush.msk.msra.mxu1 %vm254_vm1, %v236_v38  ;;  %493 = vmatpush.msk.msra.mxu2 %vm254_vm1, %v236_v38 }
 0x119   : > { %494 = vmatpush.msk.msra.mxu3 %vm254_vm1, %v236_v38  ;;  %481 = vmatmul.msk.f32.vlgmr.msra.gmra.mxu1 %vm241_vm2, %v237_v39 }
 0x11a   : > { %482 = vmatmul.msk.f32.vlgmr.msra.gmra.mxu2 %vm241_vm2, %v238_v40  ;;  %484 = vmatmul.msk.f32.vlgmr.msra.gmra.mxu3 %vm241_vm2, %v240_v41 }
 0x122   : > { %483 = vmatmul.msk.f32.gmra.mxu2 %vm241_vm2, %v239_v42 }
 0x196   : > { %v275_v44 = vpop.f32.mrf.mxu1 }
 0x197   : > { %v485_v45 = vmul.f32 -1.442695, %v275_v44 }
 0x199   : > { %507 = vpow2.f32 %v485_v45 }
 0x19d   : > { %v278_v46 = vpop.f32.mrf.mxu2  ;;  %v284_v47 = vpop.f32.mrf.mxu3 }
 0x19e   : > { %v486_v48 = vmul.f32 -1.442695, %v278_v46  ;;  %v488_v49 = vmul.f32 -1.442695, %v284_v47 }
 0x19f   : > { %v508_v50 = vpop.eup %507 }
 0x1a0   : > { %v299_v51 = vadd.f32 1.0, %v508_v50  ;;  %509 = vpow2.f32 %v486_v48 }
 0x1a1   : > { %511 = vpow2.f32 %v488_v49 }
 0x1a2   : > { %513 = vrcp.f32 %v299_v51  ;;  %v314_v60 = vand.u32 2147483648, %v299_v51  ;;  %vm308_vm3 = vweird.f32 %v299_v51  ;;  %v312_v62 = vand.u32 2147483647, %v299_v51 }
 0x1a4   : > { %v315_v8 = vor.u32 1.1754944e-38, %v314_v60  ;;  %vm313_vm6 = vcmp.eq.f32.partialorder %v312_v62, 8.507059e+37 }
 0x1a5   : > { %v281_v52 = vpop.f32.mrf.mxu2 }
 0x1a6   : > { %v510_v53 = vpop.eup %509  ;;  %v487_v54 = vmul.f32 -1.442695, %v281_v52 }
 0x1a7   : > { %v512_v55 = vpop.eup %511  ;;  %v300_v56 = vadd.f32 1.0, %v510_v53 }
 0x1a8   : > { %v514_v57 = vpop.eup %513  ;;  %v302_v58 = vadd.f32 1.0, %v512_v55  ;;  %515 = vpow2.f32 %v487_v54 }
 0x1a9   : > { %517 = vrcp.f32 %v300_v56  ;;  %v304_v59 = vmul.f32 %v514_v57, %v299_v51  ;;  %vm309_vm4 = vweird.f32 %v514_v57  ;;  %v329_v30 = vand.u32 2147483648, %v300_v56 }
 0x1aa   : > { %519 = vrcp.f32 %v302_v58  ;;  %vm310_vm5 = vmor %vm308_vm3, %vm309_vm4  ;;  %vm353_vm7 = vweird.f32 %v302_v58  ;;  %v359_v28 = vand.u32 2147483648, %v302_v58  ;;  %v357_v32 = vand.u32 2147483647, %v302_v58 }
 0x1ab   : > { %v305_v61 = vsub.f32 1.0, %v304_v59  ;;  %v327_v33 = vand.u32 2147483647, %v300_v56  ;;  %vm323_vm10 = vweird.f32 %v300_v56  ;;  %v330_v39 = vor.u32 1.1754944e-38, %v329_v30 }
 0x1ac   : > { %v360_v37 = vor.u32 1.1754944e-38, %v359_v28  ;;  %vm358_vm13 = vcmp.eq.f32.partialorder %v357_v32, 8.507059e+37 }
 0x1ad   : > { %v306_v63 = vmul.f32 %v514_v57, %v305_v61  ;;  %vm328_vm14 = vcmp.eq.f32.partialorder %v327_v33, 8.507059e+37 }
 0x1ae   : > { %v516_v3 = vpop.eup %515 }
 0x1af   : > { %v518_v10 = vpop.eup %517  ;;  %v301_v13 = vadd.f32 1.0, %v516_v3  ;;  %v307_v15 = vadd.f32 %v514_v57, %v306_v63 }
 0x1b0   : > { %v520_v18 = vpop.eup %519  ;;  %v319_v20 = vmul.f32 %v518_v10, %v300_v56  ;;  %vm324_vm8 = vweird.f32 %v518_v10 }
 0x1b1   : > { %521 = vrcp.f32 %v301_v13  ;;  %v311_v21 = vsel %vm310_vm5, %v514_v57, %v307_v15  ;;  %v349_v22 = vmul.f32 %v520_v18, %v302_v58  ;;  %vm354_vm9 = vweird.f32 %v520_v18  ;;  %vm325_vm11 = vmor %vm323_vm10, %vm324_vm8 }
 0x1b2   : > { %v316_v24 = vsel %vm313_vm6, %v315_v8, %v311_v21  ;;  %v320_v26 = vsub.f32 1.0, %v319_v20  ;;  %vm355_vm12 = vmor %vm353_vm7, %vm354_vm9  ;;  %v344_v45 = vand.u32 2147483648, %v301_v13  ;;  %v342_v47 = vand.u32 2147483647, %v301_v13 }
 0x1b3   : > { %365 = vperm.xlu2 %504, %v316_v24   ;;  %v350_v27 = vsub.f32 1.0, %v349_v22  ;;  %vm338_vm0 = vweird.f32 %v301_v13 }
 0x1b4   : > { %v321_v29 = vmul.f32 %v518_v10, %v320_v26  ;;  %v345_v49 = vor.u32 1.1754944e-38, %v344_v45  ;;  %vm343_vm2 = vcmp.eq.f32.partialorder %v342_v47, 8.507059e+37 }
 0x1b5   : > { %v351_v31 = vmul.f32 %v520_v18, %v350_v27 }
 0x1b6   : > { %v322_v34 = vadd.f32 %v518_v10, %v321_v29 }
 0x1b7   : > { %v522_v35 = vpop.eup %521  ;;  %v352_v36 = vadd.f32 %v520_v18, %v351_v31 }
 0x1b8   : > { %v326_v38 = vsel %vm325_vm11, %v518_v10, %v322_v34  ;;  %v334_v40 = vmul.f32 %v522_v35, %v301_v13  ;;  %vm339_vm15 = vweird.f32 %v522_v35 }
 0x1b9   : > { %v356_v41 = vsel %vm355_vm12, %v520_v18, %v352_v36  ;;  %v331_v43 = vsel %vm328_vm14, %v330_v39, %v326_v38  ;;  %vm340_vm1 = vmor %vm338_vm0, %vm339_vm15 }
 0x1ba   : > { %v361_v42 = vsel %vm358_vm13, %v360_v37, %v356_v41  ;;  %v335_v44 = vsub.f32 1.0, %v334_v40 }
 0x1bb   : > { %380 = vperm.xlu1 %506, %v361_v42   ;;  %370 = vperm.xlu2 %504, %v331_v43  }
 0x1bc   : > { %v336_v46 = vmul.f32 %v522_v35, %v335_v44 }
 0x1be   : > { %v337_v48 = vadd.f32 %v522_v35, %v336_v46 }
 0x1c0   : > { %v341_v50 = vsel %vm340_vm1, %v522_v35, %v337_v48 }
 0x1c1   : > { %v346_v51 = vsel %vm343_vm2, %v345_v49, %v341_v50 }
 0x1c2   : > { %375 = vperm.xlu0 %505, %v346_v51  }
 0x20d   : > { %v366_v52 = vpop.permute.xlu2 %365 }
 0x20e   : > { %v383_v53 = vmul.f32 %v366_v52, %v598_v16  ;;  %v384_v54 = vmul.f32 %v366_v52, %v600_v17  ;;  %v385_v55 = vmul.f32 %v366_v52, %v603_v19  ;;  %v386_v16 = vmul.f32 %v366_v52, %v612_v25 }
 0x210   : > { %399 = vst [vmem:[%s639_s30] sm:$0xff] %v383_v53 }
 0x211   : > { %400 = vst [vmem:[%s639_s30 + $0x8] sm:$0xff] %v384_v54 }
 0x212   : > { %401 = vst [vmem:[%s639_s30 + $0x10] sm:$0xff] %v385_v55 }
 0x213   : > { %402 = vst [vmem:[%s639_s30 + $0x18] sm:$0xff] %v386_v16 }
 0x215   : > { %v371_v17 = vpop.permute.xlu2 %370 }
 0x216   : > { %v387_v19 = vmul.f32 %v371_v17, %v576_v4  ;;  %v388_v56 = vmul.f32 %v371_v17, %v578_v5  ;;  %v389_v57 = vmul.f32 %v371_v17, %v582_v7  ;;  %v390_v58 = vmul.f32 %v371_v17, %v589_v11 }
 0x218   : > { %403 = vst [vmem:[%s639_s30 + $0x20] sm:$0xff] %v387_v19 }
 0x219   : > { %404 = vst [vmem:[%s639_s30 + $0x28] sm:$0xff] %v388_v56 }
 0x21a   : > { %405 = vst [vmem:[%s639_s30 + $0x30] sm:$0xff] %v389_v57 }
 0x21b   : > { %406 = vst [vmem:[%s639_s30 + $0x38] sm:$0xff] %v390_v58 }
 0x22d   : > { %v381_v25 = vpop.permute.xlu1 %380 }
 0x22e   : > { %v395_v59 = vmul.f32 %v381_v25, %v568_v0  ;;  %v396_v4 = vmul.f32 %v381_v25, %v570_v1  ;;  %v397_v60 = vmul.f32 %v381_v25, %v572_v2  ;;  %v398_v5 = vmul.f32 %v381_v25, %v580_v6 }
 0x230   : > { %411 = vst [vmem:[%s639_s30 + $0x60] sm:$0xff] %v395_v59 }
 0x231   : > { %412 = vst [vmem:[%s639_s30 + $0x68] sm:$0xff] %v396_v4 }
 0x232   : > { %413 = vst [vmem:[%s639_s30 + $0x70] sm:$0xff] %v397_v60 }
 0x233   : > { %414 = vst [vmem:[%s639_s30 + $0x78] sm:$0xff] %v398_v5 }
 0x234   : > { %v376_v7 = vpop.permute.xlu0 %375 }
 0x235   : > { %v391_v11 = vmul.f32 %v376_v7, %v586_v9  ;;  %v392_v61 = vmul.f32 %v376_v7, %v591_v12  ;;  %v393_v62 = vmul.f32 %v376_v7, %v594_v14  ;;  %v394_v0 = vmul.f32 %v376_v7, %v609_v23 }
 0x237   : > { %407 = vst [vmem:[%s639_s30 + $0x40] sm:$0xff] %v391_v11 }
 0x238   : > { %408 = vst [vmem:[%s639_s30 + $0x48] sm:$0xff] %v392_v61 }
 0x239   : > { %409 = vst [vmem:[%s639_s30 + $0x50] sm:$0xff] %v393_v62 }
 0x23a   : > { %410 = vst [vmem:[%s639_s30 + $0x58] sm:$0xff] %v394_v0 }
 0x23b PF: > { %s13_s12 = sadd.s32 1, %s529_s12  }
 0x23c   : > { %p10_p4 = scmp.ge.s32.totalorder %s13_s12, 4  }
 0x23e   :  { %12 = sbr.rel (!%p10_p4) target bundleno = 1 (0x1), region = 62 }

</bundles_post_ra>
